<compile_context>
chip_gen: v5e
topology: v5e:2x2
jax: 0.10.0
libtpu: 0.0.40
codegen_flags: <defaults>
</compile_context>

<pallas_src>
import jax
import jax.numpy as jnp
from jax.experimental import pallas as pl
from jax.experimental.pallas import tpu as pltpu

_LANES = 512           # lane width of one output row (multiple of 128)
_MAX_BLOCK_ROWS = 512  # sublane rows per block (multiple of 8): 1 MiB out / 2 MiB in


def _relu_sum_kernel(w_ref, b_ref, xt_ref, o_ref):
    # xt_ref: (2, TR, LANES) VMEM block -- plane 0 = feature 0, plane 1 = feature 1
    x0 = xt_ref[0]                      # (TR, LANES)
    x1 = xt_ref[1]                      # (TR, LANES)

    # Scalar weights / bias from SMEM.  PyTorch Linear: y_j = sum_i x_i * W[j, i] + b_j
    w00 = w_ref[0]
    w01 = w_ref[1]
    w10 = w_ref[2]
    w11 = w_ref[3]
    b0 = b_ref[0]
    b1 = b_ref[1]

    a0 = x0 * w00 + x1 * w01 + b0       # pre-activation of unit 0
    a1 = x0 * w10 + x1 * w11 + b1       # pre-activation of unit 1

    # ReLU then sum over the two units (dim=1 of the original (N, 2) activations)
    o_ref[...] = jnp.maximum(a0, 0.0) + jnp.maximum(a1, 0.0)


def _choose_tiling(n):
    """Pick (block_rows, padded_rows) for a (rows, _LANES) output slab."""
    rows = max(1, pl.cdiv(n, _LANES))
    tr = min(_MAX_BLOCK_ROWS, ((rows + 7) // 8) * 8)
    # v7x has 2 TensorCores splitting the "parallel" grid axis: prefer >= 2
    # grid steps whenever there is more than one 8-row tile of work.
    if rows > 8 and pl.cdiv(rows, tr) < 2:
        tr = max(8, ((tr // 2 + 7) // 8) * 8)
    r_pad = pl.cdiv(rows, tr) * tr
    return tr, r_pad


@jax.jit
def model_relu1_forward(x, w, b):
    """x: (N, 2), w: (2, 2) (out, in), b: (2,)  ->  (N,) f32.
    (For N == 1 PyTorch's .squeeze() also drops the batch dim; we match that.)"""
    n = x.shape[0]
    tr, r_pad = _choose_tiling(n)
    n_pad = r_pad * _LANES

    # Feature-major slab layout: (N, 2) -> (2, R_pad, 512).  See TODO above.
    xt_full = x.astype(jnp.float32).T                       # (2, N)
    if n == n_pad:
        xt = xt_full.reshape(2, r_pad, _LANES)
    else:
        xt = (jnp.zeros((2, n_pad), jnp.float32)
                 .at[:, :n].set(xt_full)
                 .reshape(2, r_pad, _LANES))

    w_flat = w.reshape(-1).astype(jnp.float32)              # [w00, w01, w10, w11]
    b_flat = b.reshape(-1).astype(jnp.float32)              # [b0, b1]

    out = pl.pallas_call(
        _relu_sum_kernel,
        out_shape=jax.ShapeDtypeStruct((r_pad, _LANES), jnp.float32),
        grid=(r_pad // tr,),
        in_specs=[
            pl.BlockSpec(memory_space=pltpu.MemorySpace.SMEM),     # w (4,) scalars
            pl.BlockSpec(memory_space=pltpu.MemorySpace.SMEM),     # b (2,) scalars
            pl.BlockSpec((2, tr, _LANES), lambda i: (0, i, 0)),    # x^T slab block
        ],
        out_specs=pl.BlockSpec((tr, _LANES), lambda i: (i, 0)),    # dense output slab
        compiler_params=pltpu.CompilerParams(
            dimension_semantics=("parallel",),
        ),
    )(w_flat, b_flat, xt)

    res = out.reshape(-1)
    if n != n_pad:
        res = res[:n]        # padded tail lanes (relu(b0)+relu(b1)) are discarded
    if n == 1:
        res = res[0]         # match torch .squeeze() dropping the batch dim too
    return res


def init_params(key):
    """Mirror the module's __init__: kaiming_normal_(weight, nonlinearity='relu')
    on a (2, 2) weight (fan_in=2, gain=sqrt(2) -> std=1.0), zeros bias."""
    out_features, in_features = 2, 2
    gain = jnp.sqrt(2.0)
    std = gain / jnp.sqrt(jnp.float32(in_features))
    w = std * jax.random.normal(key, (out_features, in_features), dtype=jnp.float32)
    b = jnp.zeros((out_features,), dtype=jnp.float32)
    return w, b


if __name__ == "__main__":
    key = jax.random.PRNGKey(0)
    k_w, k_x = jax.random.split(key)

    # Small batch of 2-feature inputs, consistent with nn.Linear(2, 2).
    # N = 1000 is not slab-aligned, so the ragged-tail (pad + slice) path is exercised.
    N = 1000
    x = jax.random.normal(k_x, (N, 2), dtype=jnp.float32)
    w, b = init_params(k_w)

    y = model_relu1_forward(x, w, b)
    y = jax.block_until_ready(y)

    # Reference check in plain JAX (same math, outside Pallas)
    y_ref = jnp.sum(jnp.maximum(x @ w.T + b, 0.0), axis=1)
    assert y.shape == (N,)
    assert jnp.allclose(y, y_ref, atol=1e-5, rtol=1e-5)

    print("KERNEL_OK")
</pallas_src>

<mosaic_0001>
module attributes {stable_mosaic.version = 11 : i64} {
  func.func @_relu_sum_kernel(%arg0: i32, %arg1: memref<4xf32, #tpu.memory_space<smem>>, %arg2: memref<2xf32, #tpu.memory_space<smem>>, %arg3: memref<2x8x512xf32, #tpu.memory_space<vmem>>, %arg4: memref<8x512xf32, #tpu.memory_space<vmem>>) attributes {dimension_semantics = [#tpu.dimension_semantics<parallel>], iteration_bounds = array<i64: 1>, scalar_prefetch = 0 : i64, scratch_operands = 0 : i64, tpu.core_type = #tpu.core_type<tc>, window_params = [{transform_indices = @transform_0, window_bounds = array<i64: 4>}, {transform_indices = @transform_1, window_bounds = array<i64: 2>}, {transform_indices = @transform_2, window_bounds = array<i64: 2, 8, 512>}, {transform_indices = @transform_3, window_bounds = array<i64: 8, 512>}]} {
    %c0 = arith.constant 0 : index
    %c0_0 = arith.constant 0 : index
    %c0_1 = arith.constant 0 : index
    %0 = vector.load %arg3[%c0, %c0_0, %c0_1] : memref<2x8x512xf32, #tpu.memory_space<vmem>>, vector<1x8x512xf32>
    %1 = vector.shape_cast %0 : vector<1x8x512xf32> to vector<8x512xf32>
    %c1 = arith.constant 1 : index
    %c0_2 = arith.constant 0 : index
    %c0_3 = arith.constant 0 : index
    %2 = vector.load %arg3[%c1, %c0_2, %c0_3] : memref<2x8x512xf32, #tpu.memory_space<vmem>>, vector<1x8x512xf32>
    %3 = vector.shape_cast %2 : vector<1x8x512xf32> to vector<8x512xf32>
    %c0_4 = arith.constant 0 : index
    %4 = memref.load %arg1[%c0_4] : memref<4xf32, #tpu.memory_space<smem>>
    %c1_5 = arith.constant 1 : index
    %5 = memref.load %arg1[%c1_5] : memref<4xf32, #tpu.memory_space<smem>>
    %c2 = arith.constant 2 : index
    %6 = memref.load %arg1[%c2] : memref<4xf32, #tpu.memory_space<smem>>
    %c3 = arith.constant 3 : index
    %7 = memref.load %arg1[%c3] : memref<4xf32, #tpu.memory_space<smem>>
    %c0_6 = arith.constant 0 : index
    %8 = memref.load %arg2[%c0_6] : memref<2xf32, #tpu.memory_space<smem>>
    %c1_7 = arith.constant 1 : index
    %9 = memref.load %arg2[%c1_7] : memref<2xf32, #tpu.memory_space<smem>>
    %10 = vector.broadcast %4 : f32 to vector<8x512xf32>
    %11 = arith.mulf %1, %10 : vector<8x512xf32>
    %12 = vector.broadcast %5 : f32 to vector<8x512xf32>
    %13 = arith.mulf %3, %12 : vector<8x512xf32>
    %14 = arith.addf %11, %13 : vector<8x512xf32>
    %15 = vector.broadcast %8 : f32 to vector<8x512xf32>
    %16 = arith.addf %14, %15 : vector<8x512xf32>
    %17 = vector.broadcast %6 : f32 to vector<8x512xf32>
    %18 = arith.mulf %1, %17 : vector<8x512xf32>
    %19 = vector.broadcast %7 : f32 to vector<8x512xf32>
    %20 = arith.mulf %3, %19 : vector<8x512xf32>
    %21 = arith.addf %18, %20 : vector<8x512xf32>
    %22 = vector.broadcast %9 : f32 to vector<8x512xf32>
    %23 = arith.addf %21, %22 : vector<8x512xf32>
    %cst = arith.constant 0.000000e+00 : f32
    %24 = vector.broadcast %cst : f32 to vector<8x512xf32>
    %25 = arith.maximumf %16, %24 : vector<8x512xf32>
    %cst_8 = arith.constant 0.000000e+00 : f32
    %26 = vector.broadcast %cst_8 : f32 to vector<8x512xf32>
    %27 = arith.maximumf %23, %26 : vector<8x512xf32>
    %28 = arith.addf %25, %27 : vector<8x512xf32>
    %c0_9 = arith.constant 0 : index
    %c0_10 = arith.constant 0 : index
    %29 = vector.load %arg4[%c0_9, %c0_10] : memref<8x512xf32, #tpu.memory_space<vmem>>, vector<8x512xf32>
    tpu.vector_store %arg4[%c0_9, %c0_10], %28 {strides = array<i32>} : memref<8x512xf32, #tpu.memory_space<vmem>>, vector<8x512xf32>,
    return
  }
  func.func @transform_0(%arg0: i32) -> i32 {
    %c0_i32 = arith.constant 0 : i32
    %c0_i32_0 = arith.constant 0 : i32
    return %c0_i32 : i32
  }
  func.func @transform_1(%arg0: i32) -> i32 {
    %c0_i32 = arith.constant 0 : i32
    %c0_i32_0 = arith.constant 0 : i32
    return %c0_i32 : i32
  }
  func.func @transform_2(%arg0: i32) -> (i32, i32, i32) {
    %c0_i32 = arith.constant 0 : i32
    %c0_i32_0 = arith.constant 0 : i32
    %c0_i32_1 = arith.constant 0 : i32
    return %c0_i32, %arg0, %c0_i32_0 : i32, i32, i32
  }
  func.func @transform_3(%arg0: i32) -> (i32, i32) {
    %c0_i32 = arith.constant 0 : i32
    %c0_i32_0 = arith.constant 0 : i32
    return %arg0, %c0_i32 : i32, i32
  }
}

</mosaic_0001>

<bundles_post_ra>
// kernel: model_relu1_forward.1
= control target key start
LH: loop header
LB: loop body
LE: loop exit
PB: predicated region body
PF: predicated region fallthrough
CT: control target
= control target key end

     0   :  { %8 = vsyncpa [#allocation3], 0  ;;  %s216_s0 = inlined_call_operand.vmem [shape: f32[4], index: 0, kind: input, shape index: {}]   ;;  %s217_s1 = inlined_call_operand.vmem [shape: f32[2], index: 1, kind: input, shape index: {}]   ;;  %s218_s2 = inlined_call_operand.vmem [shape: f32[2,8,512], index: 2, kind: input, shape index: {}]   ;;  %s219_s3 = inlined_call_operand.vmem [shape: f32[8,512], index: 3, kind: output, shape index: {}]  }
   0x1   :  { %s15_s14 = sshll.u32 %s216_s0, 4  ;;  %s16_s14 = int_to_ptr.vmem [resolvable:$true] %s15_s14 }
   0x2   :  { %9 = vsyncpa [#allocation5], 0  ;;  %s24_s17 = sshll.u32 %s217_s1, 4  ;;  %s152_s18 = smov [#allocation2]   ;;  %s25_s17 = int_to_ptr.vmem [resolvable:$true] %s24_s17 }
   0x3   :  { %18 = dma.vmem_to_smem %s16_s14, 16, %s152_s18, [#allocation3]  }
   0x4   :  { %s153_s19 = smov [#allocation4]  }
   0x5   :  { %27 = dma.vmem_to_smem %s25_s17, 16, %s153_s19, [#allocation5]  }
   0x6   :  { %148 = dma.done.wait [#allocation3], 16  }
   0x7   :  { %149 = vsyncadd [#allocation3], 4294967280 }
   0x8   :  { %150 = dma.done.wait [#allocation5], 16  }
   0x9   :  { %151 = vsyncadd [#allocation5], 4294967280 }
   0xa   :  { %38 = sfence }
   0xb   :  { %s48_s20 = sld [smem:[#allocation2]]  ;;  %v39_v0 = vld [vmem:[%s218_s2] sm:$0xff]  ;;  %v40_v1 = vld [vmem:[%s218_s2 + $0x8] sm:$0xff]  ;;  %v41_v2 = vld [vmem:[%s218_s2 + $0x10] sm:$0xff] }
   0xc   :  { %s118_s21 = sld [smem:[#allocation2 + $0x1]]  ;;  %v114_v3 = vld [vmem:[%s218_s2 + $0x20] sm:$0xff]  ;;  %v115_v4 = vld [vmem:[%s218_s2 + $0x28] sm:$0xff]  ;;  %v116_v5 = vld [vmem:[%s218_s2 + $0x30] sm:$0xff] }
   0xd   :  { %s119_s22 = sld [smem:[#allocation2 + $0x2]]  ;;  %v42_v19 = vld [vmem:[%s218_s2 + $0x18] sm:$0xff] }
   0xe   :  { %s120_s0 = sld [smem:[#allocation2 + $0x3]]  ;;  %v117_v24 = vld [vmem:[%s218_s2 + $0x38] sm:$0xff] }
   0xf   :  { %s52_s25 = sld [smem:[#allocation4]] }
  0x10   :  { %s121_s4 = sld [smem:[#allocation4 + $0x1]] }
  0x11   :  { %v54_v6 = vstv %s48_s20 }
  0x12   :  { %v55_v7 = vmul.f32 %v54_v6, %v39_v0  ;;  %v59_v8 = vstv %s118_s21  ;;  %v56_v9 = vmul.f32 %v54_v6, %v40_v1  ;;  %v57_v10 = vmul.f32 %v54_v6, %v41_v2 }
  0x13   :  { %v60_v11 = vmul.f32 %v114_v3, %v59_v8  ;;  %v73_v12 = vstv %s119_s22  ;;  %v61_v13 = vmul.f32 %v115_v4, %v59_v8  ;;  %v62_v14 = vmul.f32 %v116_v5, %v59_v8 }
  0x14   :  { %v74_v15 = vmul.f32 %v73_v12, %v39_v0  ;;  %v78_v16 = vstv %s120_s0  ;;  %v75_v17 = vmul.f32 %v73_v12, %v40_v1  ;;  %v76_v18 = vmul.f32 %v73_v12, %v41_v2 }
  0x15   :  { %v64_v20 = vadd.f32 %v60_v11, %v55_v7  ;;  %v68_v21 = vstv %s52_s25  ;;  %v79_v22 = vmul.f32 %v114_v3, %v78_v16  ;;  %v65_v23 = vadd.f32 %v61_v13, %v56_v9 }
  0x16   :  { %v87_v25 = vstv %s121_s4  ;;  %v80_v26 = vmul.f32 %v115_v4, %v78_v16  ;;  %v66_v27 = vadd.f32 %v62_v14, %v57_v10  ;;  %v81_v28 = vmul.f32 %v116_v5, %v78_v16 }
  0x17   :  { %v69_v29 = vadd.f32 %v68_v21, %v64_v20  ;;  %v83_v30 = vadd.f32 %v79_v22, %v74_v15  ;;  %v70_v31 = vadd.f32 %v68_v21, %v65_v23  ;;  %v58_v32 = vmul.f32 %v54_v6, %v42_v19 }
  0x18   :  { %v84_v33 = vadd.f32 %v80_v26, %v75_v17  ;;  %v71_v34 = vadd.f32 %v68_v21, %v66_v27  ;;  %v85_v35 = vadd.f32 %v81_v28, %v76_v18  ;;  %v63_v36 = vmul.f32 %v117_v24, %v59_v8 }
  0x19   :  { %v88_v37 = vadd.f32 %v87_v25, %v83_v30  ;;  %v92_v38 = vmax.f32 %v69_v29, 0.0  ;;  %v93_v39 = vmax.f32 %v70_v31, 0.0  ;;  %v77_v40 = vmul.f32 %v73_v12, %v42_v19 }
  0x1a   :  { %v89_v41 = vadd.f32 %v87_v25, %v84_v33  ;;  %v90_v42 = vadd.f32 %v87_v25, %v85_v35  ;;  %v94_v43 = vmax.f32 %v71_v34, 0.0  ;;  %v67_v44 = vadd.f32 %v63_v36, %v58_v32 }
  0x1b   :  { %v96_v45 = vmax.f32 %v88_v37, 0.0  ;;  %v82_v46 = vmul.f32 %v117_v24, %v78_v16 }
  0x1c   :  { %v97_v47 = vmax.f32 %v89_v41, 0.0  ;;  %v98_v48 = vmax.f32 %v90_v42, 0.0  ;;  %v72_v49 = vadd.f32 %v68_v21, %v67_v44 }
  0x1d   :  { %v100_v50 = vadd.f32 %v96_v45, %v92_v38  ;;  %v86_v51 = vadd.f32 %v82_v46, %v77_v40 }
  0x1e   :  { %v101_v52 = vadd.f32 %v97_v47, %v93_v39  ;;  %v102_v53 = vadd.f32 %v98_v48, %v94_v43  ;;  %v95_v55 = vmax.f32 %v72_v49, 0.0 }
  0x1f   :  { %104 = vst [vmem:[%s219_s3] sm:$0xff] %v100_v50  ;;  %v91_v54 = vadd.f32 %v87_v25, %v86_v51 }
  0x20   :  { %105 = vst [vmem:[%s219_s3 + $0x8] sm:$0xff] %v101_v52 }
  0x21   :  { %106 = vst [vmem:[%s219_s3 + $0x10] sm:$0xff] %v102_v53  ;;  %v99_v56 = vmax.f32 %v91_v54, 0.0 }
  0x23   :  { %v103_v57 = vadd.f32 %v99_v56, %v95_v55 }
  0x25   :  { %107 = vst [vmem:[%s219_s3 + $0x18] sm:$0xff] %v103_v57 }
  0x26   :  { %112 = vsyncpa [#allocation3], 1 }
  0x27   :  { %113 = vsyncpa [#allocation5], 1 }

</bundles_post_ra>
